<compile_context>
chip_gen: v7x
topology: tpu7x:2x2x1
jax: 0.10.0
libtpu: 0.0.40
codegen_flags: <defaults>
</compile_context>

<pallas_src>
import functools
import math

import jax
import jax.numpy as jnp
from jax.experimental import pallas as pl
from jax.experimental.pallas import tpu as pltpu

LANE = 128
# Single-buffered working-set budget per grid step (pipeline double-buffers,
# so peak VMEM ~2x this: well inside the 32 MiB scoped default on v5e/v6e and
# the 64 MiB physical VMEM of a v7x TensorCore).
_PER_STEP_BUDGET_BYTES = 6 * 1024 * 1024


def _ceil_div(a, b):
    return -(-a // b)


def _sublane_multiple(dtype):
    itemsize = jnp.dtype(dtype).itemsize
    return max(8, 32 // itemsize)      # 8 for f32, 16 for bf16, 32 for int8/fp8


# -----------------------------------------------------------------------------
# Plain-JAX glue: per-block orthonormal matrices from (angles, mus), mirroring
# tansacnet's OrthonormalTransform (Analysis mode) Givens-product construction.
# Coefficients are pinned to float32 regardless of parameter dtypes.
# -----------------------------------------------------------------------------
def build_orthonormal_matrices(angles, mus, n):
    """angles: (nblks, n*(n-1)//2), mus: (nblks, n) -> R: (nblks, n, n) f32."""
    angles = angles.astype(jnp.float32)
    mus = mus.astype(jnp.float32)
    nblks = mus.shape[0]
    R = jnp.broadcast_to(jnp.eye(n, dtype=jnp.float32), (nblks, n, n))
    iAng = 0
    for iTop in range(n - 1):
        vt = R[:, iTop, :]
        for iBtm in range(iTop + 1, n):
            ang = angles[:, iAng][:, None]
            c, s = jnp.cos(ang), jnp.sin(ang)
            vb = R[:, iBtm, :]
            new_vb = s * vt + c * vb
            vt = c * vt - s * vb
            R = R.at[:, iBtm, :].set(new_vb)
            iAng += 1
        R = R.at[:, iTop, :].set(vt)
    return mus[:, :, None] * R


def build_orthonormal_matrices_cnb(angles, mus, n):
    """Same math, built directly in (row, col, block) kernel layout, f32."""
    angles = angles.astype(jnp.float32)
    mus = mus.astype(jnp.float32)
    nblks = mus.shape[0]
    R = jnp.broadcast_to(jnp.eye(n, dtype=jnp.float32)[:, :, None], (n, n, nblks))
    iAng = 0
    for iTop in range(n - 1):
        vt = R[iTop]                                   # (n, nblks)
        for iBtm in range(iTop + 1, n):
            ang = angles[:, iAng][None, :]             # (1, nblks)
            c, s = jnp.cos(ang), jnp.sin(ang)
            vb = R[iBtm]
            new_vb = s * vt + c * vb
            vt = c * vt - s * vb
            R = R.at[iBtm].set(new_vb)
            iAng += 1
        R = R.at[iTop].set(vt)
    return jnp.transpose(mus)[:, None, :] * R          # scale row i by mus[:, i]


# -----------------------------------------------------------------------------
# Tiling selection for the (rows, 128) block-axis view.
# -----------------------------------------------------------------------------
def _select_row_tiling(n_rows, bytes_per_row, sub_mult):
    """Return (SUB, grid, padded_rows)."""
    if n_rows <= sub_mult:
        # Tiny problem: a single full-extent block (allowed because the block
        # dim equals the array dim even when it is not a multiple of 8).
        return n_rows, 1, n_rows
    sub_cap = max(sub_mult,
                  (_PER_STEP_BUDGET_BYTES // max(bytes_per_row, 1))
                  // sub_mult * sub_mult)
    # Keep at least 2 grid steps so the "parallel" axis can shard across the
    # two TensorCores of a v7x chip (harmless on v5e/v6e).
    grid = max(2, _ceil_div(n_rows, sub_cap))
    sub = sub_mult * _ceil_div(_ceil_div(n_rows, grid), sub_mult)
    grid = _ceil_div(n_rows, sub)
    return sub, grid, grid * sub


# -----------------------------------------------------------------------------
# Pallas kernel factory.  Each grid step processes a (SUB, 128) tile of spatial
# blocks; the row axis is walked in one-vreg chunks with hoisted operands and
# f32 accumulation, storing directly into z_ref.
# -----------------------------------------------------------------------------
def _make_rot_kernel(ps, pa, nSamples, chunk_rows, n_chunks,
                     unroll_chunks, hoist_coeffs):
    f32 = jnp.float32

    def kernel(w_ref, u_ref, y_ref, z_ref):
        # w_ref: (ps, ps, SUB, LANE) f32, u_ref: (pa, pa, SUB, LANE) f32
        # y_ref, z_ref: (nChs, nSamples, SUB, LANE) io_dtype
        out_dtype = z_ref.dtype

        def process_chunk(ci):
            start = ci * chunk_rows
            if not isinstance(start, int):
                start = pl.multiple_of(start, chunk_rows)
            rs = pl.ds(start, chunk_rows)

            if hoist_coeffs:
                # Load each coefficient chunk ONCE per chunk, reuse across samples.
                w = [[w_ref[c, d, rs, :].astype(f32) for d in range(ps)]
                     for c in range(ps)]
                u = [[u_ref[c, d, rs, :].astype(f32) for d in range(pa)]
                     for c in range(pa)]

            for s in range(nSamples):
                # --- top channels: Zs = W0 @ Ys ---
                ys = [y_ref[d, s, rs, :].astype(f32) for d in range(ps)]
                for c in range(ps):
                    wc = (w[c] if hoist_coeffs else
                          [w_ref[c, d, rs, :].astype(f32) for d in range(ps)])
                    acc = wc[0] * ys[0]
                    for d in range(1, ps):
                        acc = acc + wc[d] * ys[d]
                    z_ref[c, s, rs, :] = acc.astype(out_dtype)
                # --- bottom channels: Za = U0 @ Ya ---
                ya = [y_ref[ps + d, s, rs, :].astype(f32) for d in range(pa)]
                for c in range(pa):
                    uc = (u[c] if hoist_coeffs else
                          [u_ref[c, d, rs, :].astype(f32) for d in range(pa)])
                    acc = uc[0] * ya[0]
                    for d in range(1, pa):
                        acc = acc + uc[d] * ya[d]
                    z_ref[ps + c, s, rs, :] = acc.astype(out_dtype)

        if unroll_chunks:
            for ci in range(n_chunks):
                process_chunk(ci)
        else:
            def body(ci, carry):
                process_chunk(ci)
                return carry
            jax.lax.fori_loop(0, n_chunks, body, 0)

    return kernel


# -----------------------------------------------------------------------------
# Packed entry point: operate directly on the (nChs, nSamples, nblks) layout.
# Adjacent LSUN layers can stay in this layout to skip the NHWC transposes.
# -----------------------------------------------------------------------------
def lsun_initial_rotation_2d_packed(Wc, Uc, Yk):
    """Wc: (ps, ps, nblks) f32, Uc: (pa, pa, nblks) f32,
    Yk: (nChs, nSamples, nblks) -> Zk: same shape/dtype as Yk."""
    ps = Wc.shape[0]
    pa = Uc.shape[0]
    nChs, nSamples, nblks = Yk.shape
    io_dtype = Yk.dtype
    io_item = jnp.dtype(io_dtype).itemsize
    sub_mult = _sublane_multiple(io_dtype)

    n_rows = _ceil_div(nblks, LANE)
    bytes_per_row = LANE * ((ps * ps + pa * pa) * 4 + 2 * nChs * nSamples * io_item)
    SUB, grid, rows_pad = _select_row_tiling(n_rows, bytes_per_row, sub_mult)
    nblk_pad = rows_pad * LANE
    pad = nblk_pad - nblks

    if pad:
        Wc = jnp.pad(Wc, ((0, 0), (0, 0), (0, pad)))
        Uc = jnp.pad(Uc, ((0, 0), (0, 0), (0, pad)))
        Yk = jnp.pad(Yk, ((0, 0), (0, 0), (0, pad)))
    Wk = Wc.reshape(ps, ps, rows_pad, LANE)
    Uk = Uc.reshape(pa, pa, rows_pad, LANE)
    Yk4 = Yk.reshape(nChs, nSamples, rows_pad, LANE)

    chunk_rows = sub_mult if SUB % sub_mult == 0 else SUB
    n_chunks = SUB // chunk_rows
    # Hoist coefficient vregs across samples only while register use stays small.
    hoist_coeffs = (ps * ps + pa * pa) * _ceil_div(chunk_rows, 8) <= 24
    unroll_chunks = n_chunks <= 8

    kernel = _make_rot_kernel(ps, pa, nSamples, chunk_rows, n_chunks,
                              unroll_chunks, hoist_coeffs)

    per_step_bytes = SUB * bytes_per_row
    vmem_limit = int(min(64 << 20, max(32 << 20, 2 * per_step_bytes + (4 << 20))))

    Zk4 = pl.pallas_call(
        kernel,
        out_shape=jax.ShapeDtypeStruct((nChs, nSamples, rows_pad, LANE), io_dtype),
        grid=(grid,),
        in_specs=[
            pl.BlockSpec((ps, ps, SUB, LANE), lambda i: (0, 0, i, 0)),
            pl.BlockSpec((pa, pa, SUB, LANE), lambda i: (0, 0, i, 0)),
            pl.BlockSpec((nChs, nSamples, SUB, LANE), lambda i: (0, 0, i, 0)),
        ],
        out_specs=pl.BlockSpec((nChs, nSamples, SUB, LANE), lambda i: (0, 0, i, 0)),
        compiler_params=pltpu.CompilerParams(
            dimension_semantics=("parallel",),
            vmem_limit_bytes=vmem_limit),
    )(Wk, Uk, Yk4)

    Zk = Zk4.reshape(nChs, nSamples, nblk_pad)
    if pad:
        Zk = Zk[:, :, :nblks]
    return Zk


# -----------------------------------------------------------------------------
# Public wrapper reproducing LsunInitialRotation2dLayer.forward (NHWC-ish I/O).
# The whole thing is jitted so relayout / pad passes fuse around the kernel.
# -----------------------------------------------------------------------------
def _lsun_initial_rotation_2d_impl(X, anglesW, anglesU, musW, musU,
                                   stride, no_dc_leakage):
    nSamples, nrows, ncols, nChs = X.shape
    nDecs = math.prod(stride)
    ps = math.ceil(nDecs / 2.0)
    pa = nDecs // 2
    assert nChs == ps + pa and pa >= 1
    nblks = nrows * ncols

    if no_dc_leakage:
        musW = musW.at[:, 0].set(1.0)
        if ps > 1:
            anglesW = anglesW.at[:, : ps - 1].set(0.0)

    # Rotation coefficients, built directly in kernel layout (row, col, block).
    Wc = build_orthonormal_matrices_cnb(anglesW, musW, ps)    # (ps, ps, nblks)
    Uc = build_orthonormal_matrices_cnb(anglesU, musU, pa)    # (pa, pa, nblks)

    # Single relayout pass into the packed (nChs, nSamples, nblks) layout.
    Yk = jnp.transpose(X.reshape(nSamples, nblks, nChs), (2, 0, 1))
    Zk = lsun_initial_rotation_2d_packed(Wc, Uc, Yk)
    Z = jnp.transpose(Zk, (1, 2, 0)).reshape(nSamples, nrows, ncols, nChs)
    return Z


_impl_jit = jax.jit(_lsun_initial_rotation_2d_impl, static_argnums=(5, 6))


def lsun_initial_rotation_2d(X, anglesW, anglesU, musW, musU, stride,
                             no_dc_leakage=False):
    # TODO(synk): training-time autograd through the Givens construction is not
    # implemented here; only the forward pass is provided.
    return _impl_jit(X, anglesW, anglesU, musW, musU, tuple(stride),
                     bool(no_dc_leakage))


# Pure-JAX reference (same math, no Pallas) for correctness checks.
def lsun_initial_rotation_2d_ref(X, anglesW, anglesU, musW, musU, stride,
                                 no_dc_leakage=False):
    nSamples, nrows, ncols, nChs = X.shape
    nDecs = math.prod(stride)
    ps = math.ceil(nDecs / 2.0)
    pa = nDecs // 2
    nblks = nrows * ncols
    if no_dc_leakage:
        musW = musW.at[:, 0].set(1.0)
        if ps > 1:
            anglesW = anglesW.at[:, : ps - 1].set(0.0)
    W0 = build_orthonormal_matrices(anglesW, musW, ps)
    U0 = build_orthonormal_matrices(anglesU, musU, pa)
    Y = jnp.transpose(X, (1, 2, 3, 0)).reshape(nblks, nChs, nSamples)
    Zs = jnp.einsum('bij,bjs->bis', W0, Y[:, :ps, :].astype(jnp.float32))
    Za = jnp.einsum('bij,bjs->bis', U0, Y[:, ps:, :].astype(jnp.float32))
    Z = jnp.concatenate([Zs, Za], axis=1).reshape(nrows, ncols, nChs, nSamples)
    return jnp.transpose(Z, (3, 0, 1, 2)).astype(X.dtype)


if __name__ == "__main__":
    def run_case(key, stride, number_of_blocks, nSamples, no_dc_leakage):
        nrows, ncols = number_of_blocks
        nDecs = math.prod(stride)
        ps = math.ceil(nDecs / 2.0)
        pa = nDecs // 2
        nChs = ps + pa
        nblks = nrows * ncols
        kx, kw, ku = jax.random.split(key, 3)
        X = jax.random.normal(kx, (nSamples, nrows, ncols, nChs), dtype=jnp.float32)
        nAnglesW = ps * (ps - 1) // 2
        nAnglesU = pa * (pa - 1) // 2
        anglesW = 0.5 * jax.random.normal(kw, (nblks, nAnglesW), dtype=jnp.float32)
        anglesU = 0.5 * jax.random.normal(ku, (nblks, nAnglesU), dtype=jnp.float32)
        musW = jnp.ones((nblks, ps), dtype=jnp.float32)
        musU = jnp.ones((nblks, pa), dtype=jnp.float32)

        Z = lsun_initial_rotation_2d(X, anglesW, anglesU, musW, musU, stride,
                                     no_dc_leakage=no_dc_leakage)
        Z = jax.block_until_ready(Z)
        Z_ref = lsun_initial_rotation_2d_ref(X, anglesW, anglesU, musW, musU,
                                             stride, no_dc_leakage=no_dc_leakage)
        assert Z.shape == (nSamples, nrows, ncols, nChs)
        assert jnp.allclose(Z, Z_ref, atol=1e-5, rtol=1e-5), (
            f"mismatch for stride={stride}, blocks={number_of_blocks}, "
            f"no_dc_leakage={no_dc_leakage}")

    key = jax.random.PRNGKey(0)
    k1, k2, k3, k4 = jax.random.split(key, 4)
    # Default module configuration: stride=[2,2] -> nChs=4, blocks 8x8.
    run_case(k1, (2, 2), (8, 8), 2, False)
    # no_dc_leakage branch (musW[:,0]=1, first ps-1 W angles zeroed).
    run_case(k2, (2, 2), (8, 8), 2, True)
    # Larger channel count: stride=[2,4] -> ps=pa=4, nChs=8.
    run_case(k3, (2, 4), (16, 16), 2, False)
    # Enough blocks to exercise grid>=2 and the fori_loop chunk path.
    run_case(k4, (2, 2), (144, 144), 2, False)

    print("KERNEL_OK")
</pallas_src>

<mosaic_0001>
module attributes {stable_mosaic.version = 11 : i64} {
  func.func @kernel(%arg0: i32, %arg1: memref<2x2x1x128xf32, #tpu.memory_space<vmem>>, %arg2: memref<2x2x1x128xf32, #tpu.memory_space<vmem>>, %arg3: memref<4x2x1x128xf32, #tpu.memory_space<vmem>>, %arg4: memref<4x2x1x128xf32, #tpu.memory_space<vmem>>) attributes {dimension_semantics = [#tpu.dimension_semantics<parallel>], iteration_bounds = array<i64: 1>, scalar_prefetch = 0 : i64, scratch_operands = 0 : i64, tpu.core_type = #tpu.core_type<tc>, window_params = [{transform_indices = @transform_0, window_bounds = array<i64: 2, 2, 1, 128>}, {transform_indices = @transform_1, window_bounds = array<i64: 2, 2, 1, 128>}, {transform_indices = @transform_2, window_bounds = array<i64: 4, 2, 1, 128>}, {transform_indices = @transform_3, window_bounds = array<i64: 4, 2, 1, 128>}]} {
    %c0 = arith.constant 0 : index
    %c0_0 = arith.constant 0 : index
    %c0_1 = arith.constant 0 : index
    %c0_2 = arith.constant 0 : index
    %0 = vector.load %arg1[%c0, %c0_0, %c0_1, %c0_2] : memref<2x2x1x128xf32, #tpu.memory_space<vmem>>, vector<1x1x1x128xf32>
    %1 = vector.shape_cast %0 : vector<1x1x1x128xf32> to vector<1x128xf32>
    %c0_3 = arith.constant 0 : index
    %c1 = arith.constant 1 : index
    %c0_4 = arith.constant 0 : index
    %c0_5 = arith.constant 0 : index
    %2 = vector.load %arg1[%c0_3, %c1, %c0_4, %c0_5] : memref<2x2x1x128xf32, #tpu.memory_space<vmem>>, vector<1x1x1x128xf32>
    %3 = vector.shape_cast %2 : vector<1x1x1x128xf32> to vector<1x128xf32>
    %c1_6 = arith.constant 1 : index
    %c0_7 = arith.constant 0 : index
    %c0_8 = arith.constant 0 : index
    %c0_9 = arith.constant 0 : index
    %4 = vector.load %arg1[%c1_6, %c0_7, %c0_8, %c0_9] : memref<2x2x1x128xf32, #tpu.memory_space<vmem>>, vector<1x1x1x128xf32>
    %5 = vector.shape_cast %4 : vector<1x1x1x128xf32> to vector<1x128xf32>
    %c1_10 = arith.constant 1 : index
    %c1_11 = arith.constant 1 : index
    %c0_12 = arith.constant 0 : index
    %c0_13 = arith.constant 0 : index
    %6 = vector.load %arg1[%c1_10, %c1_11, %c0_12, %c0_13] : memref<2x2x1x128xf32, #tpu.memory_space<vmem>>, vector<1x1x1x128xf32>
    %7 = vector.shape_cast %6 : vector<1x1x1x128xf32> to vector<1x128xf32>
    %c0_14 = arith.constant 0 : index
    %c0_15 = arith.constant 0 : index
    %c0_16 = arith.constant 0 : index
    %c0_17 = arith.constant 0 : index
    %8 = vector.load %arg2[%c0_14, %c0_15, %c0_16, %c0_17] : memref<2x2x1x128xf32, #tpu.memory_space<vmem>>, vector<1x1x1x128xf32>
    %9 = vector.shape_cast %8 : vector<1x1x1x128xf32> to vector<1x128xf32>
    %c0_18 = arith.constant 0 : index
    %c1_19 = arith.constant 1 : index
    %c0_20 = arith.constant 0 : index
    %c0_21 = arith.constant 0 : index
    %10 = vector.load %arg2[%c0_18, %c1_19, %c0_20, %c0_21] : memref<2x2x1x128xf32, #tpu.memory_space<vmem>>, vector<1x1x1x128xf32>
    %11 = vector.shape_cast %10 : vector<1x1x1x128xf32> to vector<1x128xf32>
    %c1_22 = arith.constant 1 : index
    %c0_23 = arith.constant 0 : index
    %c0_24 = arith.constant 0 : index
    %c0_25 = arith.constant 0 : index
    %12 = vector.load %arg2[%c1_22, %c0_23, %c0_24, %c0_25] : memref<2x2x1x128xf32, #tpu.memory_space<vmem>>, vector<1x1x1x128xf32>
    %13 = vector.shape_cast %12 : vector<1x1x1x128xf32> to vector<1x128xf32>
    %c1_26 = arith.constant 1 : index
    %c1_27 = arith.constant 1 : index
    %c0_28 = arith.constant 0 : index
    %c0_29 = arith.constant 0 : index
    %14 = vector.load %arg2[%c1_26, %c1_27, %c0_28, %c0_29] : memref<2x2x1x128xf32, #tpu.memory_space<vmem>>, vector<1x1x1x128xf32>
    %15 = vector.shape_cast %14 : vector<1x1x1x128xf32> to vector<1x128xf32>
    %c0_30 = arith.constant 0 : index
    %c0_31 = arith.constant 0 : index
    %c0_32 = arith.constant 0 : index
    %c0_33 = arith.constant 0 : index
    %16 = vector.load %arg3[%c0_30, %c0_31, %c0_32, %c0_33] : memref<4x2x1x128xf32, #tpu.memory_space<vmem>>, vector<1x1x1x128xf32>
    %17 = vector.shape_cast %16 : vector<1x1x1x128xf32> to vector<1x128xf32>
    %c1_34 = arith.constant 1 : index
    %c0_35 = arith.constant 0 : index
    %c0_36 = arith.constant 0 : index
    %c0_37 = arith.constant 0 : index
    %18 = vector.load %arg3[%c1_34, %c0_35, %c0_36, %c0_37] : memref<4x2x1x128xf32, #tpu.memory_space<vmem>>, vector<1x1x1x128xf32>
    %19 = vector.shape_cast %18 : vector<1x1x1x128xf32> to vector<1x128xf32>
    %20 = arith.mulf %1, %17 : vector<1x128xf32>
    %21 = arith.mulf %3, %19 : vector<1x128xf32>
    %22 = arith.addf %20, %21 : vector<1x128xf32>
    %c0_38 = arith.constant 0 : index
    %c0_39 = arith.constant 0 : index
    %c0_40 = arith.constant 0 : index
    %c0_41 = arith.constant 0 : index
    %23 = vector.load %arg4[%c0_38, %c0_39, %c0_40, %c0_41] : memref<4x2x1x128xf32, #tpu.memory_space<vmem>>, vector<1x1x1x128xf32>
    %24 = vector.shape_cast %23 : vector<1x1x1x128xf32> to vector<1x128xf32>
    %25 = vector.shape_cast %22 : vector<1x128xf32> to vector<1x1x1x128xf32>
    tpu.vector_store %arg4[%c0_38, %c0_39, %c0_40, %c0_41], %25 {strides = array<i32>} : memref<4x2x1x128xf32, #tpu.memory_space<vmem>>, vector<1x1x1x128xf32>,
    %26 = arith.mulf %5, %17 : vector<1x128xf32>
    %27 = arith.mulf %7, %19 : vector<1x128xf32>
    %28 = arith.addf %26, %27 : vector<1x128xf32>
    %c1_42 = arith.constant 1 : index
    %c0_43 = arith.constant 0 : index
    %c0_44 = arith.constant 0 : index
    %c0_45 = arith.constant 0 : index
    %29 = vector.load %arg4[%c1_42, %c0_43, %c0_44, %c0_45] : memref<4x2x1x128xf32, #tpu.memory_space<vmem>>, vector<1x1x1x128xf32>
    %30 = vector.shape_cast %29 : vector<1x1x1x128xf32> to vector<1x128xf32>
    %31 = vector.shape_cast %28 : vector<1x128xf32> to vector<1x1x1x128xf32>
    tpu.vector_store %arg4[%c1_42, %c0_43, %c0_44, %c0_45], %31 {strides = array<i32>} : memref<4x2x1x128xf32, #tpu.memory_space<vmem>>, vector<1x1x1x128xf32>,
    %c2 = arith.constant 2 : index
    %c0_46 = arith.constant 0 : index
    %c0_47 = arith.constant 0 : index
    %c0_48 = arith.constant 0 : index
    %32 = vector.load %arg3[%c2, %c0_46, %c0_47, %c0_48] : memref<4x2x1x128xf32, #tpu.memory_space<vmem>>, vector<1x1x1x128xf32>
    %33 = vector.shape_cast %32 : vector<1x1x1x128xf32> to vector<1x128xf32>
    %c3 = arith.constant 3 : index
    %c0_49 = arith.constant 0 : index
    %c0_50 = arith.constant 0 : index
    %c0_51 = arith.constant 0 : index
    %34 = vector.load %arg3[%c3, %c0_49, %c0_50, %c0_51] : memref<4x2x1x128xf32, #tpu.memory_space<vmem>>, vector<1x1x1x128xf32>
    %35 = vector.shape_cast %34 : vector<1x1x1x128xf32> to vector<1x128xf32>
    %36 = arith.mulf %9, %33 : vector<1x128xf32>
    %37 = arith.mulf %11, %35 : vector<1x128xf32>
    %38 = arith.addf %36, %37 : vector<1x128xf32>
    %c2_52 = arith.constant 2 : index
    %c0_53 = arith.constant 0 : index
    %c0_54 = arith.constant 0 : index
    %c0_55 = arith.constant 0 : index
    %39 = vector.load %arg4[%c2_52, %c0_53, %c0_54, %c0_55] : memref<4x2x1x128xf32, #tpu.memory_space<vmem>>, vector<1x1x1x128xf32>
    %40 = vector.shape_cast %39 : vector<1x1x1x128xf32> to vector<1x128xf32>
    %41 = vector.shape_cast %38 : vector<1x128xf32> to vector<1x1x1x128xf32>
    tpu.vector_store %arg4[%c2_52, %c0_53, %c0_54, %c0_55], %41 {strides = array<i32>} : memref<4x2x1x128xf32, #tpu.memory_space<vmem>>, vector<1x1x1x128xf32>,
    %42 = arith.mulf %13, %33 : vector<1x128xf32>
    %43 = arith.mulf %15, %35 : vector<1x128xf32>
    %44 = arith.addf %42, %43 : vector<1x128xf32>
    %c3_56 = arith.constant 3 : index
    %c0_57 = arith.constant 0 : index
    %c0_58 = arith.constant 0 : index
    %c0_59 = arith.constant 0 : index
    %45 = vector.load %arg4[%c3_56, %c0_57, %c0_58, %c0_59] : memref<4x2x1x128xf32, #tpu.memory_space<vmem>>, vector<1x1x1x128xf32>
    %46 = vector.shape_cast %45 : vector<1x1x1x128xf32> to vector<1x128xf32>
    %47 = vector.shape_cast %44 : vector<1x128xf32> to vector<1x1x1x128xf32>
    tpu.vector_store %arg4[%c3_56, %c0_57, %c0_58, %c0_59], %47 {strides = array<i32>} : memref<4x2x1x128xf32, #tpu.memory_space<vmem>>, vector<1x1x1x128xf32>,
    %c0_60 = arith.constant 0 : index
    %c1_61 = arith.constant 1 : index
    %c0_62 = arith.constant 0 : index
    %c0_63 = arith.constant 0 : index
    %48 = vector.load %arg3[%c0_60, %c1_61, %c0_62, %c0_63] : memref<4x2x1x128xf32, #tpu.memory_space<vmem>>, vector<1x1x1x128xf32>
    %49 = vector.shape_cast %48 : vector<1x1x1x128xf32> to vector<1x128xf32>
    %c1_64 = arith.constant 1 : index
    %c1_65 = arith.constant 1 : index
    %c0_66 = arith.constant 0 : index
    %c0_67 = arith.constant 0 : index
    %50 = vector.load %arg3[%c1_64, %c1_65, %c0_66, %c0_67] : memref<4x2x1x128xf32, #tpu.memory_space<vmem>>, vector<1x1x1x128xf32>
    %51 = vector.shape_cast %50 : vector<1x1x1x128xf32> to vector<1x128xf32>
    %52 = arith.mulf %1, %49 : vector<1x128xf32>
    %53 = arith.mulf %3, %51 : vector<1x128xf32>
    %54 = arith.addf %52, %53 : vector<1x128xf32>
    %c0_68 = arith.constant 0 : index
    %c1_69 = arith.constant 1 : index
    %c0_70 = arith.constant 0 : index
    %c0_71 = arith.constant 0 : index
    %55 = vector.load %arg4[%c0_68, %c1_69, %c0_70, %c0_71] : memref<4x2x1x128xf32, #tpu.memory_space<vmem>>, vector<1x1x1x128xf32>
    %56 = vector.shape_cast %55 : vector<1x1x1x128xf32> to vector<1x128xf32>
    %57 = vector.shape_cast %54 : vector<1x128xf32> to vector<1x1x1x128xf32>
    tpu.vector_store %arg4[%c0_68, %c1_69, %c0_70, %c0_71], %57 {strides = array<i32>} : memref<4x2x1x128xf32, #tpu.memory_space<vmem>>, vector<1x1x1x128xf32>,
    %58 = arith.mulf %5, %49 : vector<1x128xf32>
    %59 = arith.mulf %7, %51 : vector<1x128xf32>
    %60 = arith.addf %58, %59 : vector<1x128xf32>
    %c1_72 = arith.constant 1 : index
    %c1_73 = arith.constant 1 : index
    %c0_74 = arith.constant 0 : index
    %c0_75 = arith.constant 0 : index
    %61 = vector.load %arg4[%c1_72, %c1_73, %c0_74, %c0_75] : memref<4x2x1x128xf32, #tpu.memory_space<vmem>>, vector<1x1x1x128xf32>
    %62 = vector.shape_cast %61 : vector<1x1x1x128xf32> to vector<1x128xf32>
    %63 = vector.shape_cast %60 : vector<1x128xf32> to vector<1x1x1x128xf32>
    tpu.vector_store %arg4[%c1_72, %c1_73, %c0_74, %c0_75], %63 {strides = array<i32>} : memref<4x2x1x128xf32, #tpu.memory_space<vmem>>, vector<1x1x1x128xf32>,
    %c2_76 = arith.constant 2 : index
    %c1_77 = arith.constant 1 : index
    %c0_78 = arith.constant 0 : index
    %c0_79 = arith.constant 0 : index
    %64 = vector.load %arg3[%c2_76, %c1_77, %c0_78, %c0_79] : memref<4x2x1x128xf32, #tpu.memory_space<vmem>>, vector<1x1x1x128xf32>
    %65 = vector.shape_cast %64 : vector<1x1x1x128xf32> to vector<1x128xf32>
    %c3_80 = arith.constant 3 : index
    %c1_81 = arith.constant 1 : index
    %c0_82 = arith.constant 0 : index
    %c0_83 = arith.constant 0 : index
    %66 = vector.load %arg3[%c3_80, %c1_81, %c0_82, %c0_83] : memref<4x2x1x128xf32, #tpu.memory_space<vmem>>, vector<1x1x1x128xf32>
    %67 = vector.shape_cast %66 : vector<1x1x1x128xf32> to vector<1x128xf32>
    %68 = arith.mulf %9, %65 : vector<1x128xf32>
    %69 = arith.mulf %11, %67 : vector<1x128xf32>
    %70 = arith.addf %68, %69 : vector<1x128xf32>
    %c2_84 = arith.constant 2 : index
    %c1_85 = arith.constant 1 : index
    %c0_86 = arith.constant 0 : index
    %c0_87 = arith.constant 0 : index
    %71 = vector.load %arg4[%c2_84, %c1_85, %c0_86, %c0_87] : memref<4x2x1x128xf32, #tpu.memory_space<vmem>>, vector<1x1x1x128xf32>
    %72 = vector.shape_cast %71 : vector<1x1x1x128xf32> to vector<1x128xf32>
    %73 = vector.shape_cast %70 : vector<1x128xf32> to vector<1x1x1x128xf32>
    tpu.vector_store %arg4[%c2_84, %c1_85, %c0_86, %c0_87], %73 {strides = array<i32>} : memref<4x2x1x128xf32, #tpu.memory_space<vmem>>, vector<1x1x1x128xf32>,
    %74 = arith.mulf %13, %65 : vector<1x128xf32>
    %75 = arith.mulf %15, %67 : vector<1x128xf32>
    %76 = arith.addf %74, %75 : vector<1x128xf32>
    %c3_88 = arith.constant 3 : index
    %c1_89 = arith.constant 1 : index
    %c0_90 = arith.constant 0 : index
    %c0_91 = arith.constant 0 : index
    %77 = vector.load %arg4[%c3_88, %c1_89, %c0_90, %c0_91] : memref<4x2x1x128xf32, #tpu.memory_space<vmem>>, vector<1x1x1x128xf32>
    %78 = vector.shape_cast %77 : vector<1x1x1x128xf32> to vector<1x128xf32>
    %79 = vector.shape_cast %76 : vector<1x128xf32> to vector<1x1x1x128xf32>
    tpu.vector_store %arg4[%c3_88, %c1_89, %c0_90, %c0_91], %79 {strides = array<i32>} : memref<4x2x1x128xf32, #tpu.memory_space<vmem>>, vector<1x1x1x128xf32>,
    return
  }
  func.func @transform_0(%arg0: i32) -> (i32, i32, i32, i32) {
    %c0_i32 = arith.constant 0 : i32
    %c0_i32_0 = arith.constant 0 : i32
    %c0_i32_1 = arith.constant 0 : i32
    %c0_i32_2 = arith.constant 0 : i32
    return %c0_i32, %c0_i32_0, %arg0, %c0_i32_1 : i32, i32, i32, i32
  }
  func.func @transform_1(%arg0: i32) -> (i32, i32, i32, i32) {
    %c0_i32 = arith.constant 0 : i32
    %c0_i32_0 = arith.constant 0 : i32
    %c0_i32_1 = arith.constant 0 : i32
    %c0_i32_2 = arith.constant 0 : i32
    return %c0_i32, %c0_i32_0, %arg0, %c0_i32_1 : i32, i32, i32, i32
  }
  func.func @transform_2(%arg0: i32) -> (i32, i32, i32, i32) {
    %c0_i32 = arith.constant 0 : i32
    %c0_i32_0 = arith.constant 0 : i32
    %c0_i32_1 = arith.constant 0 : i32
    %c0_i32_2 = arith.constant 0 : i32
    return %c0_i32, %c0_i32_0, %arg0, %c0_i32_1 : i32, i32, i32, i32
  }
  func.func @transform_3(%arg0: i32) -> (i32, i32, i32, i32) {
    %c0_i32 = arith.constant 0 : i32
    %c0_i32_0 = arith.constant 0 : i32
    %c0_i32_1 = arith.constant 0 : i32
    %c0_i32_2 = arith.constant 0 : i32
    return %c0_i32, %c0_i32_0, %arg0, %c0_i32_1 : i32, i32, i32, i32
  }
}

</mosaic_0001>

<bundles_post_ra>
// kernel: _lsun_initial_rotation_2d_impl.1
= control target key start
LH: loop header
LB: loop body
LE: loop exit
PB: predicated region body
PF: predicated region fallthrough
CT: control target
= control target key end

     0   :  { %s198_s0 = inlined_call_operand.vmem [shape: f32[2,2,1,128], index: 0, kind: input, shape index: {}]   ;;  %s199_s2 = inlined_call_operand.vmem [shape: f32[4,2,1,128], index: 2, kind: input, shape index: {}]   ;;  %s200_s1 = inlined_call_operand.vmem [shape: f32[2,2,1,128], index: 1, kind: input, shape index: {}]   ;;  %s201_s3 = inlined_call_operand.vmem [shape: f32[4,2,1,128], index: 3, kind: output, shape index: {}]  }
   0x1   :  { %v14_v0 = vld [vmem:[%s198_s0] sm:$0x1]  ;;  %v86_v1 = vld [vmem:[%s198_s0 + $0x1] sm:$0x1]  ;;  %v92_v3 = vld [vmem:[%s199_s2 + $0x2] sm:$0x1] }
   0x2   :  { %v28_v2 = vld [vmem:[%s199_s2] sm:$0x1]  ;;  %v87_v5 = vld [vmem:[%s198_s0 + $0x2] sm:$0x1]  ;;  %v88_v6 = vld [vmem:[%s198_s0 + $0x3] sm:$0x1]  ;;  %v32_v7 = vmul.f32 %v92_v3, %v86_v1 }
   0x3   :  { %v31_v4 = vmul.f32 %v28_v2, %v14_v0  ;;  %v35_v8 = vmul.f32 %v87_v5, %v28_v2  ;;  %v36_v9 = vmul.f32 %v92_v3, %v88_v6  ;;  %v21_v10 = vld [vmem:[%s200_s1] sm:$0x1]  ;;  %v89_v11 = vld [vmem:[%s200_s1 + $0x1] sm:$0x1]  ;;  %v94_v12 = vld [vmem:[%s199_s2 + $0x4] sm:$0x1] }
   0x4   :  { %v95_v13 = vld [vmem:[%s199_s2 + $0x6] sm:$0x1]  ;;  %v44_v14 = vmul.f32 %v94_v12, %v21_v10  ;;  %v90_v15 = vld [vmem:[%s200_s1 + $0x2] sm:$0x1]  ;;  %v91_v16 = vld [vmem:[%s200_s1 + $0x3] sm:$0x1] }
   0x5   :  { %v33_v17 = vadd.f32 %v32_v7, %v31_v4  ;;  %v37_v18 = vadd.f32 %v36_v9, %v35_v8  ;;  %v45_v19 = vmul.f32 %v95_v13, %v89_v11  ;;  %v49_v20 = vmul.f32 %v94_v12, %v90_v15  ;;  %v98_v21 = vld [vmem:[%s199_s2 + $0x1] sm:$0x1]  ;;  %v99_v22 = vld [vmem:[%s199_s2 + $0x3] sm:$0x1]  ;;  %v102_v23 = vld [vmem:[%s199_s2 + $0x5] sm:$0x1] }
   0x6   :  { %v50_v24 = vmul.f32 %v95_v13, %v91_v16  ;;  %v58_v25 = vmul.f32 %v98_v21, %v14_v0  ;;  %v59_v26 = vmul.f32 %v99_v22, %v86_v1  ;;  %v63_v27 = vmul.f32 %v98_v21, %v87_v5  ;;  %v103_v28 = vld [vmem:[%s199_s2 + $0x7] sm:$0x1] }
   0x7   :  { %34 = vst [vmem:[%s201_s3] sm:$0x1] %v33_v17  ;;  %93 = vst [vmem:[%s201_s3 + $0x2] sm:$0x1] %v37_v18  ;;  %v46_v29 = vadd.f32 %v45_v19, %v44_v14  ;;  %v64_v30 = vmul.f32 %v99_v22, %v88_v6  ;;  %v72_v31 = vmul.f32 %v102_v23, %v21_v10 }
   0x8   :  { %v73_v32 = vmul.f32 %v103_v28, %v89_v11  ;;  %v51_v33 = vadd.f32 %v50_v24, %v49_v20  ;;  %v60_v34 = vadd.f32 %v59_v26, %v58_v25  ;;  %v77_v35 = vmul.f32 %v102_v23, %v90_v15 }
   0x9   :  { %v78_v36 = vmul.f32 %v103_v28, %v91_v16  ;;  %96 = vst [vmem:[%s201_s3 + $0x4] sm:$0x1] %v46_v29  ;;  %v65_v37 = vadd.f32 %v64_v30, %v63_v27 }
   0xa   :  { %v74_v38 = vadd.f32 %v73_v32, %v72_v31  ;;  %97 = vst [vmem:[%s201_s3 + $0x6] sm:$0x1] %v51_v33  ;;  %100 = vst [vmem:[%s201_s3 + $0x1] sm:$0x1] %v60_v34 }
   0xb   :  { %v79_v39 = vadd.f32 %v78_v36, %v77_v35  ;;  %101 = vst [vmem:[%s201_s3 + $0x3] sm:$0x1] %v65_v37 }
   0xc   :  { %104 = vst [vmem:[%s201_s3 + $0x5] sm:$0x1] %v74_v38 }
   0xd   :  { %105 = vst [vmem:[%s201_s3 + $0x7] sm:$0x1] %v79_v39 }

</bundles_post_ra>
